<compile_context>
chip_gen: v7x
topology: tpu7x:2x2x1
jax: 0.10.0
libtpu: 0.0.40
codegen_flags: <defaults>
</compile_context>

<pallas_src>
import jax
import jax.numpy as jnp
from jax.experimental import pallas as pl
from jax.experimental.pallas import tpu as pltpu


# ------------------------------ kernel --------------------------------------


def _logits_kernel(h_ref, wt_ref, o_ref):
    # [B, E] @ [E, TN] on the MXU with f32 accumulation; one V-tile per step.
    o_ref[...] = jnp.dot(
        h_ref[...], wt_ref[...], preferred_element_type=jnp.float32
    ).astype(o_ref.dtype)


# ------------------------------ wrappers ------------------------------------


def _choose_tn(V, tn_target=2048):
    """Lane-dense V-tile width; keep >= 2 tiles so v7x's two TCs split the grid."""
    if V <= 128:
        return V            # full-dim block is always layout-legal
    if V < 256:
        return 128
    half = (V // 2 // 128) * 128
    return max(128, min(tn_target, half))


def hidden_times_wt(hidden, wt, *, tn=None, out_dtype=jnp.bfloat16,
                    vmem_limit_bytes=None):
    """output = hidden @ WT, streaming WT over lane-dense V tiles.

    hidden: [B, E] (VMEM-resident across the whole grid)
    wt:     [E, V] (streamed; store it in bf16 persistently — no cast here)
    """
    B, E = hidden.shape
    E2, V = wt.shape
    assert E2 == E
    if tn is None:
        tn = _choose_tn(V)
    assert tn == V or tn % 128 == 0, "V tile must be lane-dense or the full dim"

    grid = (pl.cdiv(V, tn),)
    return pl.pallas_call(
        _logits_kernel,
        out_shape=jax.ShapeDtypeStruct((B, V), out_dtype),
        grid=grid,
        in_specs=[
            pl.BlockSpec((B, E), lambda j: (0, 0)),    # hidden: resident
            # WT: streamed V tiles; default double-buffering is enough at
            # tn >= 1024 — only add pipeline_mode=pl.Buffered(3) if profiling
            # shows exposed DMA.
            pl.BlockSpec((E, tn), lambda j: (0, j)),
        ],
        out_specs=pl.BlockSpec((B, tn), lambda j: (0, j)),
        compiler_params=pltpu.CompilerParams(
            # Independent vocabulary tiles -> shard across TCs on v7x.
            dimension_semantics=("parallel",),
            vmem_limit_bytes=vmem_limit_bytes,
        ),
    )(hidden, wt)


def word2vec_forward_indices(idx, w, wt, *, tn=None, out_dtype=jnp.bfloat16):
    """Primary entry point: forward pass from word indices.

    w: [V, E], wt: [E, V] — used in whatever dtype the caller stores them
    (store bf16 persistently; there is intentionally NO per-call cast here).
    """
    idx = idx.astype(jnp.int32)
    # one_hot(idx) @ W == W[idx]: tiny [B, E] gather, done by XLA.
    hidden = jnp.take(w, idx, axis=0)
    return hidden_times_wt(hidden, wt, tn=tn, out_dtype=out_dtype)


def word2vec_forward(x_onehot, w, wt, *, tn=None, out_dtype=jnp.bfloat16):
    """Module-compatible entry point: X is a batch of strictly one-hot rows.

    For one-hot X, X @ W == W[argmax(X, -1)].  Prefer the index path — this
    one scans the whole [B, V] one-hot just to recover the indices.
    """
    idx = jnp.argmax(x_onehot, axis=-1).astype(jnp.int32)
    return word2vec_forward_indices(idx, w, wt, tn=tn, out_dtype=out_dtype)


# ------------------------------- demo ---------------------------------------

if __name__ == "__main__":
    # Small but hardware-aligned demo shapes (the reference script hard-codes
    # embedding_size=2 and a tiny vocab; the kernels handle any (V, E, B) —
    # these values exercise V-tiling, the lane-dense output and the MXU).
    voc_size = 1024
    embedding_size = 128
    batch = 16

    key = jax.random.PRNGKey(0)
    kw, kwt, kidx = jax.random.split(key, 3)

    # Same init distribution as the module: uniform in (-1, 1].
    W_f32 = -2.0 * jax.random.uniform(
        kw, (voc_size, embedding_size), dtype=jnp.float32) + 1.0
    WT_f32 = -2.0 * jax.random.uniform(
        kwt, (embedding_size, voc_size), dtype=jnp.float32) + 1.0

    # Persistent bf16 parameter storage: one-time cast at setup, NOT per call.
    W = W_f32.astype(jnp.bfloat16)
    WT = WT_f32.astype(jnp.bfloat16)

    # Input batch: center-word indices (what the skip-gram trainer has).
    idx = jax.random.randint(kidx, (batch,), 0, voc_size, dtype=jnp.int32)

    fwd = jax.jit(word2vec_forward_indices)
    out = jax.block_until_ready(fwd(idx, W, WT))
    assert out.shape == (batch, voc_size)
    assert out.dtype == jnp.bfloat16
    out_f32 = out.astype(jnp.float32)

    # Module-compatible one-hot path gives the same logits.
    X = jax.nn.one_hot(idx, voc_size, dtype=jnp.float32)
    out_onehot = jax.block_until_ready(word2vec_forward(X, W, WT))
    assert jnp.allclose(out_f32, out_onehot.astype(jnp.float32),
                        atol=1e-3, rtol=1e-3)

    # Check 1: tight match vs a plain-JAX reference with identical dtypes
    # (bf16 weights, f32 accumulation, bf16 logits).
    ref_bf16 = jnp.dot(jnp.take(W, idx, axis=0), WT,
                       preferred_element_type=jnp.float32).astype(jnp.bfloat16)
    assert jnp.allclose(out_f32, ref_bf16.astype(jnp.float32),
                        atol=0.15, rtol=0.05)

    # Check 2: loose match vs the original f32 one-hot matmul chain.  The bf16
    # weight storage and bf16 logits are documented, intentional numerics
    # choices (~1e-2-level per-logit error at E=128 — fine for training).
    ref_f32 = X @ W_f32 @ WT_f32
    assert jnp.allclose(out_f32, ref_f32, atol=0.5, rtol=0.1)

    print("KERNEL_OK")
</pallas_src>

<mosaic_0001>
module attributes {stable_mosaic.version = 11 : i64} {
  func.func @_logits_kernel(%arg0: i32, %arg1: memref<16x128xbf16, #tpu.memory_space<vmem>>, %arg2: memref<128x512xbf16, #tpu.memory_space<vmem>>, %arg3: memref<16x512xbf16, #tpu.memory_space<vmem>>) attributes {dimension_semantics = [#tpu.dimension_semantics<parallel>], iteration_bounds = array<i64: 2>, scalar_prefetch = 0 : i64, scratch_operands = 0 : i64, tpu.core_type = #tpu.core_type<tc>, window_params = [{pipeline_mode = #tpu.pipeline_mode<synchronous>, transform_indices = @transform_0, window_bounds = array<i64: 16, 128>}, {transform_indices = @transform_1, window_bounds = array<i64: 128, 512>}, {transform_indices = @transform_2, window_bounds = array<i64: 16, 512>}]} {
    %c0 = arith.constant 0 : index
    %c0_0 = arith.constant 0 : index
    %0 = vector.load %arg1[%c0, %c0_0] : memref<16x128xbf16, #tpu.memory_space<vmem>>, vector<16x128xbf16>
    %c0_1 = arith.constant 0 : index
    %c0_2 = arith.constant 0 : index
    %1 = vector.load %arg2[%c0_1, %c0_2] : memref<128x512xbf16, #tpu.memory_space<vmem>>, vector<128x512xbf16>
    %cst = arith.constant dense<0.000000e+00> : vector<16x512xf32>
    %2 = tpu.matmul %0, %1, %cst {dimension_numbers = #tpu.dot_dimension_numbers<[1], [0], [0], [1], [0, 0, 1, 1], [], []>} : vector<16x128xbf16>, vector<128x512xbf16>, vector<16x512xf32> -> vector<16x512xf32>
    %3 = arith.truncf %2 : vector<16x512xf32> to vector<16x512xbf16>
    %c0_3 = arith.constant 0 : index
    %c0_4 = arith.constant 0 : index
    %4 = vector.load %arg3[%c0_3, %c0_4] : memref<16x512xbf16, #tpu.memory_space<vmem>>, vector<16x512xbf16>
    tpu.vector_store %arg3[%c0_3, %c0_4], %3 {strides = array<i32>} : memref<16x512xbf16, #tpu.memory_space<vmem>>, vector<16x512xbf16>,
    return
  }
  func.func @transform_0(%arg0: i32) -> (i32, i32) {
    %c0_i32 = arith.constant 0 : i32
    %c0_i32_0 = arith.constant 0 : i32
    %c0_i32_1 = arith.constant 0 : i32
    return %c0_i32, %c0_i32_0 : i32, i32
  }
  func.func @transform_1(%arg0: i32) -> (i32, i32) {
    %c0_i32 = arith.constant 0 : i32
    %c0_i32_0 = arith.constant 0 : i32
    return %c0_i32, %arg0 : i32, i32
  }
  func.func @transform_2(%arg0: i32) -> (i32, i32) {
    %c0_i32 = arith.constant 0 : i32
    %c0_i32_0 = arith.constant 0 : i32
    return %c0_i32, %arg0 : i32, i32
  }
}

</mosaic_0001>

<bundles_post_ra>
// kernel: word2vec_forward_indices.1
= control target key start
LH: loop header
LB: loop body
LE: loop exit
PB: predicated region body
PF: predicated region fallthrough
CT: control target
= control target key end

     0   :  { %7 = vsyncpa [#allocation3], 0  ;;  %s1049_s0 = inlined_call_operand.vmem [shape: bf16[16,128], index: 0, kind: input, shape index: {}]   ;;  %s1050_s1 = inlined_call_operand.hbm [shape: bf16[128,1024], index: 1, kind: input, shape index: {}]   ;;  %s1051_s2 = inlined_call_operand.hbm [shape: bf16[16,1024], index: 2, kind: output, shape index: {}]  }
   0x1   :  { %9 = vsyncpa [#allocation3 + $0x1], 0 }
   0x2   :  { %10 = vsyncpa [#allocation4], 0 }
   0x3   :  { %12 = vsyncpa [#allocation4 + $0x1], 0  ;;  %s847_s9 = smov 0   ;;  %s849_s10 = smov 0  }
   0x4   :  { %s851_s11 = smov 0   ;;  %s853_s12 = smov 0  }
   0x5 LB: > { %s868_s13 = sadd.s32 4294967295, %s821_s12   ;;  %s566_s14 = sadd.s32 4294967294, %s821_s12   ;;  %s821_s12 = sphi %s853_s12, %s1065_s12   ;;  %s817_s11 = sphi %s851_s11, %s1064_s11   ;;  %s813_s10 = sphi %s849_s10, %s1063_s10   ;;  %s809_s9 = sphi %s847_s9, %s1062_s9  }
   0x6   : > { %s872_s15 = sadd.s32 1, %s821_s12   ;;  %s46_s16 = sadd.s32 1, %s817_s11 }
   0x7   : > { %s43_s17 = ssub.s32 %s821_s12, %s872_s15  ;;  %p53_p0 = scmp.ne.s32.totalorder %s817_s11, %s813_s10 }
   0x8   : > { %p44_p1 = scmp.eq.s32.totalorder %s43_s17, 0  ;;  %p54_p2 = scmp.eq.s32.totalorder %s821_s12, 0 }
   0x9   : > { %p59_p3 = scmp.ne.s32.totalorder %s813_s10, %s809_s9  ;;  %p60_p4 = scmp.eq.s32.totalorder %s868_s13, 0 }
   0xa   : > { %s884_s18 = scalar_select %p44_p1, %s817_s11, %s46_s16  }
   0xb   : > { %p886_p5 = por %p54_p2, %p53_p0  ;;  %p890_p6 = por %p60_p4, %p59_p3 }
   0xc   : > { %p83_p7 = scmp.eq.s32.totalorder %s868_s13, 1  ;;  %p89_p8 = scmp.eq.s32.totalorder %s566_s14, 1 }
   0xd   : > { %p635_p10 = scmp.lt.s32.totalorder %s821_s12, 2  ;;  %s112_s23 = sand.u32 1, %s817_s11  }
   0xe   : > { %p897_p11 = por %p83_p7, %p53_p0  ;;  %p901_p12 = por %p89_p8, %p59_p3 }
   0xf   : > { %s617_s24 = sshll.u32 %s821_s12, 8  ;;  %s569_s25 = sshll.u32 %s112_s23, 8 }
  0x10   : > { %s1055_s21 = scalar_select %p897_p11, 1, 0 }
  0x11   : > { %s1056_s22 = scalar_select %p901_p12, 1, 0 }
  0x12   : > { %s910_s28 = scalar_lea.hbm %s1050_s1, %s617_s24  ;;  %s116_s29 = scalar_lea.vmem [#allocation2], %s569_s25 }
  0x13   : > { %s123_s30 = sshll.u32 %s116_s29, 4  ;;  %p914_p13 = pnand %p635_p10, %p886_p5  ;;  %s918_s30 = int_to_ptr.vmem [resolvable:$true] %s123_s30 }
  0x14   : > { %s921_s4 = scalar_lea.sflag [#allocation3], %s112_s23  ;;  %s725_s5 = scalar_lea.hbm %s910_s28, 4096 }
  0x15   : > { %p726_p1 = scmp.ne.s32.totalorder %s910_s28, %s725_s5  ;;  %p727_p2 = pneg %p914_p13 }
  0x16   : > { %s730_s8 = scalar_lea.hbm %s1050_s1, 8192  ;;  %p731_p5 = scmp.lt.u32.totalorder %s910_s28, %s1050_s1 }
  0x17   : > { %p728_p3 = pnand %p727_p2, %p726_p1  ;;  %p732_p7 = scmp.lt.u32.totalorder %s730_s8, %s725_s5 }
  0x18   : > { %p734_p10 = scmp.lt.u32.totalorder %s725_s5, %s910_s28 }
  0x19   : > { %p729_p4 = pneg %p728_p3  ;;  %p733_p8 = por %p732_p7, %p731_p5 }
  0x1b   : > { %p735_p9 = por %p734_p10, %p733_p8 }
  0x1d   : > { %p736_p0 = pnand %p735_p9, %p729_p4 }
  0x1f   : > { %739 = shalt.err (!%p736_p0)
}
  0x20   : > { %s740_s17 = scalar_lea.vmem %s918_s30, 4096  ;;  %s823_s19 = smov [#allocation2]  }
  0x21   : > { %p741_p1 = scmp.ne.s32.totalorder %s918_s30, %s740_s17  ;;  %s745_s23 = sshll.u32 %s823_s19, 4  ;;  %s746_s23 = int_to_ptr.vmem [resolvable:$false] %s745_s23 }
  0x22   : > { %s747_s24 = scalar_lea.vmem %s746_s23, 8192  ;;  %p748_p11 = scmp.lt.s32.totalorder %s918_s30, %s746_s23 }
  0x23   : > { %p743_p3 = pnand %p741_p1, %p727_p2  ;;  %p749_p5 = scmp.lt.s32.totalorder %s747_s24, %s740_s17 }
  0x25   : > { %p744_p12 = pneg %p743_p3  ;;  %p750_p7 = por %p749_p5, %p748_p11 }
  0x27   : > { %p751_p8 = pnand %p750_p7, %p744_p12 }
  0x29   : > { %754 = shalt.err (!%p751_p8)
}
  0x2a   : > { %s824_s25 = smov 512   ;;  %s825_s26 = smov 256  }
  0x2b   : > { %s826_s27 = smov 16   ;;  %p131_p9 = scmp.lt.s32.totalorder %s821_s12, 3 }
  0x2c   : > { %630 = dma.hbm_to_vmem [thread:$0]  (!%p914_p13), %s910_s28, 4096, %s918_s30, %s921_s4, %s824_s25, %s825_s26, %s826_s27  }
  0x2d   : > { %p1058_p0 = scmp.ge.s32.totalorder %s821_s12, 1 }
  0x2f   : > { %p132_p2 = pnand %p1058_p0, %p131_p9 }
  0x30   : > { %s953_s29 = sand.u32 (!%p132_p2), 1, %s813_s10  }
  0x31   : > { %135 = sbr.rel (%p132_p2) target bundleno = 324 (0x144), region = 28  ;;  %s573_s5 = sshll.u32 (!%p132_p2), %s953_s29, 8 }
  0x32   : > { %s138_s6 = scalar_lea.sflag (!%p132_p2), [#allocation3], %s953_s29  ;;  %s957_s7 = scalar_lea.vmem (!%p132_p2), [#allocation2], %s573_s5 }
  0x38   : > { %800 = dma.done.wait (%p890_p6), %s138_s6, 4096  }
  0x39   : > { %802 = vsyncadd (%p890_p6), %s138_s6, 4294963200  ;;  %v827_v0 = vmov 0   ;;  %v676_v1 = vld [vmem:[%s957_s7 + $0x4] ss:$16 sps:$4 sm:$0xff]   ;;  %v678_v2 = vld [vmem:[%s957_s7 + $0xc] ss:$16 sps:$4 sm:$0xff]  }
  0x3a   : > { %397 = vmatprep.mubr.bf16.mxu0 %v827_v0  ;;  %440 = vmatprep.mubr.bf16.mxu1 %v827_v0  ;;  %v680_v3 = vld [vmem:[%s957_s7] ss:$16 sps:$4 sm:$0xff]   ;;  %v681_v4 = vld [vmem:[%s957_s7 + $0x8] ss:$16 sps:$4 sm:$0xff]   ;;  %v682_v5 = vld [vmem:[%s957_s7 + $0x24] ss:$16 sps:$4 sm:$0xff]  }
  0x3b   : > { %365 = vmatprep.subr.bf16.mxu0 %v676_v1  ;;  %408 = vmatprep.subr.bf16.mxu1 %v678_v2  ;;  %v684_v6 = vld [vmem:[%s957_s7 + $0x2c] ss:$16 sps:$4 sm:$0xff]   ;;  %v686_v7 = vld [vmem:[%s957_s7 + $0x20] ss:$16 sps:$4 sm:$0xff]   ;;  %v687_v8 = vld [vmem:[%s957_s7 + $0x28] ss:$16 sps:$4 sm:$0xff]  }
  0x3c   : > { %366 = vmatpush1.bf16.msra.mxu0 %v680_v3  ;;  %409 = vmatpush1.bf16.msra.mxu1 %v681_v4  ;;  %v688_v9 = vld [vmem:[%s957_s7 + $0x44] ss:$16 sps:$4 sm:$0xff]   ;;  %v690_v10 = vld [vmem:[%s957_s7 + $0x4c] ss:$16 sps:$4 sm:$0xff]   ;;  %v692_v11 = vld [vmem:[%s957_s7 + $0x40] ss:$16 sps:$4 sm:$0xff]  }
  0x3d   : > { %367 = vmatprep.subr.bf16.mxu0 %v682_v5  ;;  %410 = vmatprep.subr.bf16.mxu1 %v684_v6  ;;  %v693_v12 = vld [vmem:[%s957_s7 + $0x48] ss:$16 sps:$4 sm:$0xff]   ;;  %v694_v13 = vld [vmem:[%s957_s7 + $0x64] ss:$16 sps:$4 sm:$0xff]   ;;  %v696_v14 = vld [vmem:[%s957_s7 + $0x6c] ss:$16 sps:$4 sm:$0xff]  }
  0x3e   : > { %v698_v15 = vld [vmem:[%s957_s7 + $0x60] ss:$16 sps:$4 sm:$0xff]   ;;  %v699_v16 = vld [vmem:[%s957_s7 + $0x68] ss:$16 sps:$4 sm:$0xff]   ;;  %v700_v17 = vld [vmem:[%s957_s7 + $0x84] ss:$16 sps:$4 sm:$0xff]  }
  0x3f   : > { %v702_v18 = vld [vmem:[%s957_s7 + $0x8c] ss:$16 sps:$4 sm:$0xff]   ;;  %v704_v19 = vld [vmem:[%s957_s7 + $0x80] ss:$16 sps:$4 sm:$0xff]   ;;  %v705_v20 = vld [vmem:[%s957_s7 + $0x88] ss:$16 sps:$4 sm:$0xff]  }
  0x40   : > { %368 = vmatpush1.bf16.msra.mxu0 %v686_v7  ;;  %411 = vmatpush1.bf16.msra.mxu1 %v687_v8  ;;  %v706_v21 = vld [vmem:[%s957_s7 + $0xa4] ss:$16 sps:$4 sm:$0xff]   ;;  %v708_v22 = vld [vmem:[%s957_s7 + $0xac] ss:$16 sps:$4 sm:$0xff]   ;;  %v710_v23 = vld [vmem:[%s957_s7 + $0xa0] ss:$16 sps:$4 sm:$0xff]  }
  0x41   : > { %369 = vmatprep.subr.bf16.mxu0 %v688_v9  ;;  %412 = vmatprep.subr.bf16.mxu1 %v690_v10  ;;  %v711_v24 = vld [vmem:[%s957_s7 + $0xa8] ss:$16 sps:$4 sm:$0xff]   ;;  %v712_v25 = vld [vmem:[%s957_s7 + $0xc4] ss:$16 sps:$4 sm:$0xff]   ;;  %v714_v26 = vld [vmem:[%s957_s7 + $0xcc] ss:$16 sps:$4 sm:$0xff]  }
  0x42   : > { %v716_v27 = vld [vmem:[%s957_s7 + $0xc0] ss:$16 sps:$4 sm:$0xff]   ;;  %v717_v28 = vld [vmem:[%s957_s7 + $0xc8] ss:$16 sps:$4 sm:$0xff]   ;;  %v718_v29 = vld [vmem:[%s957_s7 + $0xe4] ss:$16 sps:$4 sm:$0xff]  }
  0x43   : > { %v720_v30 = vld [vmem:[%s957_s7 + $0xec] ss:$16 sps:$4 sm:$0xff]   ;;  %v722_v31 = vld [vmem:[%s957_s7 + $0xe0] ss:$16 sps:$4 sm:$0xff]   ;;  %v723_v32 = vld [vmem:[%s957_s7 + $0xe8] ss:$16 sps:$4 sm:$0xff]  }
  0x44   : > { %370 = vmatpush1.bf16.msra.mxu0 %v692_v11  ;;  %413 = vmatpush1.bf16.msra.mxu1 %v693_v12  ;;  %v724_v33 = vld [vmem:[%s1049_s0] sm:$0xff]   ;;  %s574_s30 = sshll.u32 %s953_s29, 5  ;;  %s622_s8 = sshll.u32 %s868_s13, 8 }
  0x45   : > { %371 = vmatprep.subr.bf16.mxu0 %v694_v13  ;;  %414 = vmatprep.subr.bf16.mxu1 %v696_v14  ;;  %s161_s3 = scalar_lea.vmem [#allocation5], %s574_s30  ;;  %s1005_s17 = scalar_lea.hbm %s1051_s2, %s622_s8 }
  0x46   : > { %s493_s4 = sshll.u32 %s161_s3, 4  ;;  %s480_s13 = scalar_lea.sflag [#allocation4], %s953_s29  ;;  %s1000_s4 = int_to_ptr.vmem [resolvable:$true] %s493_s4 }
  0x47   : > { %s755_s19 = scalar_lea.vmem %s1000_s4, 512  ;;  %p1059_p11 = scmp.ne.s32.totalorder %s1055_s21, 0 }
  0x48   : > { %372 = vmatpush1.bf16.msra.mxu0 %v698_v15  ;;  %415 = vmatpush1.bf16.msra.mxu1 %v699_v16  ;;  %p756_p6 = scmp.ne.s32.totalorder %s1000_s4, %s755_s19  ;;  %s828_s23 = smov [#allocation5]  }
  0x49   : > { %373 = vmatprep.subr.bf16.mxu0 %v700_v17  ;;  %416 = vmatprep.subr.bf16.mxu1 %v702_v18  ;;  %s759_s24 = sshll.u32 %s828_s23, 4  ;;  %s760_s24 = int_to_ptr.vmem [resolvable:$false] %s759_s24 }
  0x4a   : > { %p757_p12 = pnand %p756_p6, %p1059_p11  ;;  %s761_s25 = scalar_lea.vmem %s760_s24, 1024 }
  0x4b   : > { %p762_p4 = scmp.lt.s32.totalorder %s1000_s4, %s760_s24  ;;  %p763_p10 = scmp.lt.s32.totalorder %s761_s25, %s755_s19 }
  0x4c   : > { %374 = vmatpush1.bf16.msra.mxu0 %v704_v19  ;;  %417 = vmatpush1.bf16.msra.mxu1 %v705_v20  ;;  %p758_p13 = pneg %p757_p12 }
  0x4d   : > { %375 = vmatprep.subr.bf16.mxu0 %v706_v21  ;;  %418 = vmatprep.subr.bf16.mxu1 %v708_v22  ;;  %p764_p1 = por %p763_p10, %p762_p4 }
  0x4f   : > { %p765_p3 = pnand %p764_p1, %p758_p13 }
  0x50   : > { %376 = vmatpush1.bf16.msra.mxu0 %v710_v23  ;;  %419 = vmatpush1.bf16.msra.mxu1 %v711_v24 }
  0x51   : > { %377 = vmatprep.subr.bf16.mxu0 %v712_v25  ;;  %420 = vmatprep.subr.bf16.mxu1 %v714_v26 }
  0x54   : > { %378 = vmatpush1.bf16.msra.mxu0 %v716_v27  ;;  %421 = vmatpush1.bf16.msra.mxu1 %v717_v28 }
  0x55   : > { %379 = vmatprep.subr.bf16.mxu0 %v718_v29  ;;  %422 = vmatprep.subr.bf16.mxu1 %v720_v30 }
  0x58   : > { %380 = vmatpush1.bf16.msra.mxu0 %v722_v31  ;;  %423 = vmatpush1.bf16.msra.mxu1 %v723_v32 }
  0x5b   : > { %398 = vmatmul.mubr.bf16.vlgmr.msra.gmra.mrb[0].mxu0 %v724_v33  ;;  %441 = vmatmul.mubr.bf16.vlgmr.msra.gmra.mrb[0].mxu1 %v724_v33 }
 0x12e   : > { %v399_v34 = vpop.f32.mrb[0].mxu0  ;;  %v442_v35 = vpop.f32.mrb[0].mxu1 }
 0x12f   : > { %v401_v36 = vpop.f32.mrb[1].mxu0  ;;  %v444_v37 = vpop.f32.mrb[1].mxu1 }
 0x130   : > { %v618_v38 = vpack.c.bf16 %v401_v36, %v399_v34  ;;  %v619_v39 = vpack.c.bf16 %v444_v37, %v442_v35  ;;  %v403_v40 = vpop.f32.mrb[2].mxu0  ;;  %v446_v41 = vpop.f32.mrb[2].mxu1 }
 0x131   : > { %v405_v42 = vpop.f32.mrb[3].mxu0  ;;  %v448_v43 = vpop.f32.mrb[3].mxu1 }
 0x132   : > { %475 = vst [vmem:[%s161_s3] sm:$0xff] %v618_v38  ;;  %476 = vst [vmem:[%s161_s3 + $0x8] sm:$0xff] %v619_v39  ;;  %v620_v44 = vpack.c.bf16 %v405_v42, %v403_v40  ;;  %v621_v45 = vpack.c.bf16 %v448_v43, %v446_v41 }
 0x134   : > { %477 = vst [vmem:[%s161_s3 + $0x10] sm:$0xff] %v620_v44  ;;  %478 = vst [vmem:[%s161_s3 + $0x18] sm:$0xff] %v621_v45 }
 0x135   : > { %768 = shalt.err (!%p765_p3)
}
 0x136   : > { %s769_s26 = scalar_lea.hbm %s1005_s17, 512  ;;  %s773_s6 = scalar_lea.hbm %s1051_s2, 1024 }
 0x137   : > { %p770_p5 = scmp.ne.s32.totalorder %s1005_s17, %s769_s26  ;;  %p774_p9 = scmp.lt.u32.totalorder %s1005_s17, %s1051_s2 }
 0x138   : > { %p775_p0 = scmp.lt.u32.totalorder %s773_s6, %s769_s26  ;;  %p777_p6 = scmp.lt.u32.totalorder %s769_s26, %s1005_s17 }
 0x139   : > { %p771_p7 = pnand %p770_p5, %p1059_p11 }
 0x13a   : > { %p776_p2 = por %p775_p0, %p774_p9 }
 0x13b   : > { %p772_p8 = pneg %p771_p7 }
 0x13c   : > { %p778_p12 = por %p777_p6, %p776_p2 }
 0x13e   : > { %p779_p13 = pnand %p778_p12, %p772_p8 }
 0x140   : > { %782 = shalt.err (!%p779_p13)
}
 0x141   : > { %s829_s28 = smov 256   ;;  %s830_s30 = smov 512  }
 0x142   : > { %s831_s3 = smov 16  }
 0x143   : > { %625 = dma.vmem_to_hbm [thread:$0]  (%p1059_p11), %s1000_s4, 512, %s1005_s17, %s480_s13, %s829_s28, %s830_s30, %s831_s3  }
 0x144 PF: > { %s508_s8 = sand.u32 1, %s809_s9   ;;  %p1060_p4 = scmp.ne.s32.totalorder %s1056_s22, 0 }
 0x145   : > { %p1061_p10 = scmp.ge.s32.totalorder %s821_s12, 2  ;;  %s509_s14 = scalar_lea.sflag [#allocation4], %s508_s8 }
 0x147   : > { %p632_p1 = pnand %p1061_p10, %p1060_p4 }
 0x149   : > { %804 = dma.done.wait (!%p632_p1), %s509_s14, 512  }
 0x14a   : > { %806 = vsyncadd (!%p632_p1), %s509_s14, 4294966784  ;;  %p15_p3 = scmp.ge.s32.totalorder %s872_s15, 4   ;;  %s1062_s9 = smov %s813_s10 }
 0x14b   : > { %s1063_s10 = smov %s817_s11  ;;  %s1064_s11 = smov %s884_s18 }
 0x14c   : > { %s1065_s12 = smov %s872_s15  ;;  %17 = sbr.rel (!%p15_p3) target bundleno = 5 (0x5), region = 73 }
 0x153   :  { %514 = vsyncpa [#allocation3], 1 }
 0x154   :  { %516 = vsyncpa [#allocation3 + $0x1], 1 }
 0x155   :  { %517 = vsyncpa [#allocation4], 1 }
 0x156   :  { %519 = vsyncpa [#allocation4 + $0x1], 1 }

</bundles_post_ra>
